<compile_context>
chip_gen: v7x
topology: tpu7x:2x2x1
jax: 0.10.0
libtpu: 0.0.40
codegen_flags: <defaults>
</compile_context>

<pallas_src>
import jax
import jax.numpy as jnp
from jax.experimental import pallas as pl
from jax.experimental.pallas import tpu as pltpu

_DMA_DEPTH = 8  # in-flight row DMAs for the HBM gather fallback


def _round_up(x, m):
    return (x + m - 1) // m * m


def _vmem_budget_bytes():
    """Per-generation usable VMEM budget, leaving headroom for compiler scratch.

    ~96 MiB on v5e/v6e (128 MiB physical), ~48 MiB on v7x (64 MiB per TC).
    """
    cap = 64 * 1024 * 1024
    try:
        info = pltpu.get_tpu_info()
        cap = int(getattr(info, "vmem_capacity_bytes", cap))
    except Exception:
        pass
    return max(24 * 1024 * 1024, (cap * 3) // 4)


def _resident_table_spec(shape, single_buffer):
    """BlockSpec for a table kept VMEM-resident across the whole grid.

    Constant index_map -> the HBM->VMEM DMA happens exactly once. With
    single_buffer we also disable the default double-buffering (a second
    buffer of a never-changing block is pure VMEM waste).
    """
    index_map = lambda i: (0, 0)
    if single_buffer and hasattr(pl, "Buffered"):
        try:
            return pl.BlockSpec(shape, index_map, pipeline_mode=pl.Buffered(1))
        except TypeError:  # older BlockSpec signature without pipeline_mode
            pass
    return pl.BlockSpec(shape, index_map)


# --------------------------------------------------------------------------
# Kernels
# --------------------------------------------------------------------------
def _onehot_gather_kernel(ids_ref, emb_ref, out_ref):
    """Gather tok_block rows via a one-hot matmul on the MXU.

    ids_ref: (tok_block, 1) int32 in VMEM.
    emb_ref: (V_pad, E_pad) table, VMEM-resident across the grid.
    out_ref: (tok_block, E_pad) lane-dense output tile.
    """
    tok_block = out_ref.shape[0]
    v_pad = emb_ref.shape[0]
    vocab_iota = jax.lax.broadcasted_iota(jnp.int32, (tok_block, v_pad), 1)
    # one-hot in the table dtype (0/1 are exact in bf16 too -> native MXU rate)
    onehot = (ids_ref[...] == vocab_iota).astype(emb_ref.dtype)
    out_ref[...] = jnp.dot(
        onehot, emb_ref[...], preferred_element_type=jnp.float32
    ).astype(out_ref.dtype)


def _row_gather_kernel(ids_ref, emb_ref, out_ref, row_buf):
    """Gather tok_block rows from the VMEM-resident table, 8 rows at a time.

    ids_ref: (tok_block,) int32 in SMEM (cheap scalar reads).
    emb_ref: (V_pad, E_pad) table, VMEM-resident across the grid.
    out_ref: (tok_block, E_pad) output tile.
    row_buf: (8, E_pad) VMEM staging tile.
    """
    tok_block = out_ref.shape[0]
    n_groups = tok_block // 8

    def group(g, carry):
        base = pl.multiple_of(g * 8, 8)
        # Stage 8 gathered rows at static sublane offsets (unrolled), then
        # issue one full-width, sublane-aligned, unmasked store.
        for r in range(8):
            row = ids_ref[base + r]
            row_buf[pl.ds(r, 1), :] = emb_ref[pl.ds(row, 1), :]
        out_ref[pl.ds(base, 8), :] = row_buf[...]
        return carry

    jax.lax.fori_loop(0, n_groups, group, 0)


def _hbm_row_gather_kernel(ids_ref, emb_hbm, out_ref, sem):
    """Gather rows straight from the HBM-resident table via row DMAs.

    ids_ref: (tok_block,) int32 in SMEM.
    emb_hbm: (V, E) table left in HBM (memory_space=pl.ANY).
    out_ref: (tok_block, E) output tile in VMEM (DMA destination).
    sem    : (_DMA_DEPTH,) DMA semaphores -> depth-_DMA_DEPTH in-flight copies.
    """
    tok_block = out_ref.shape[0]

    def row_copy(t):
        row = ids_ref[t]
        return pltpu.make_async_copy(
            emb_hbm.at[pl.ds(row, 1), :],
            out_ref.at[pl.ds(t, 1), :],
            sem.at[t % _DMA_DEPTH],
        )

    # Prime the pipeline with _DMA_DEPTH in-flight row DMAs.
    for t in range(min(_DMA_DEPTH, tok_block)):
        row_copy(t).start()

    def body(t, carry):
        row_copy(t).wait()

        @pl.when(t + _DMA_DEPTH < tok_block)
        def _():
            row_copy(t + _DMA_DEPTH).start()

        return carry

    jax.lax.fori_loop(0, tok_block, body, 0)


# --------------------------------------------------------------------------
# Wrapper
# --------------------------------------------------------------------------
def word2vec_forward(token_ids, embedding_table, *, tok_block=256,
                     onehot_vocab_limit=512):
    """Embedding lookup: embedding_table[token_ids], [...] -> [..., E]."""
    V, E = embedding_table.shape
    lead_shape = token_ids.shape
    n_tok = int(token_ids.size)
    itemsize = embedding_table.dtype.itemsize
    out_dtype = embedding_table.dtype

    # PyTorch passes int64 ids; int32 covers any realistic vocab. Clamp so a
    # bad id can never address outside the table (nn.Embedding would raise).
    flat_ids = jnp.clip(token_ids.reshape(n_tok).astype(jnp.int32), 0, V - 1)

    tok_block = max(8, _round_up(int(tok_block), 8))
    # Keep at least two grid steps when there is enough work so the "parallel"
    # token axis can actually be split across v7x's two TensorCores.
    if n_tok >= 256 and n_tok <= tok_block:
        tok_block = max(128, _round_up(pl.cdiv(n_tok, 2), 128))

    n_tok_pad = _round_up(n_tok, tok_block)
    if n_tok_pad != n_tok:
        flat_ids = jnp.pad(flat_ids, (0, n_tok_pad - n_tok))  # id 0 is valid
    n_blocks = n_tok_pad // tok_block
    dims = ("parallel",)

    budget = _vmem_budget_bytes()
    e_pad = _round_up(E, 128)
    single_buffer_ok = hasattr(pl, "Buffered")
    table_bufs = 1 if single_buffer_ok else 2

    v_pad_lane = _round_up(V, 128)   # one-hot path: V is the matmul lane dim
    v_pad_sub = _round_up(V, 8)      # row-gather path: only sublane alignment

    onehot_ok = v_pad_lane <= onehot_vocab_limit
    resident_fits = (v_pad_sub * e_pad * itemsize * table_bufs
                     + 4 * tok_block * e_pad * itemsize
                     + (4 << 20)) <= budget
    # Few lookups relative to the table: a row-DMA gather moves n_tok*E bytes
    # instead of the whole table -- prefer it even when the table fits VMEM.
    sparse_lookup = n_tok * 8 < V

    # ---- Path 1: one-hot matmul gather on the MXU (small vocab) ------------
    if onehot_ok:
        v_pad = v_pad_lane
        table = embedding_table
        if (v_pad, e_pad) != (V, E):
            # TODO(synk): pre-pad the table once at init in real use; padding
            # here costs a full-table HBM read+write per call.
            table = jnp.pad(table, ((0, v_pad - V), (0, e_pad - E)))
        ids_arg = flat_ids.reshape(n_tok_pad, 1)
        table_bytes = v_pad * e_pad * itemsize

        def run(single_buffer):
            bufs = 1 if (single_buffer and single_buffer_ok) else 2
            needed = (table_bytes * bufs
                      + 2 * tok_block * 4                   # ids tiles
                      + 2 * tok_block * e_pad * itemsize    # output tiles
                      + tok_block * v_pad * 8               # iota + one-hot
                      + tok_block * e_pad * 4               # f32 matmul result
                      + (4 << 20))
            vmem_limit = int(min(budget, max(needed, 32 << 20)))
            return pl.pallas_call(
                _onehot_gather_kernel,
                out_shape=jax.ShapeDtypeStruct((n_tok_pad, e_pad), out_dtype),
                grid=(n_blocks,),
                in_specs=[
                    pl.BlockSpec((tok_block, 1), lambda i: (i, 0)),
                    _resident_table_spec((v_pad, e_pad), single_buffer),
                ],
                out_specs=pl.BlockSpec((tok_block, e_pad), lambda i: (i, 0)),
                compiler_params=pltpu.CompilerParams(
                    dimension_semantics=dims, vmem_limit_bytes=vmem_limit),
            )(ids_arg, table)

        try:
            out_flat = run(True)
        except Exception:
            out_flat = run(False)
        return out_flat[:n_tok, :E].reshape(*lead_shape, E)

    # ---- Path 2: VMEM-resident table + staged 8-row gather -----------------
    if resident_fits and not sparse_lookup:
        v_pad = v_pad_sub
        table = embedding_table
        if (v_pad, e_pad) != (V, E):
            # TODO(synk): pre-pad the table once at init in real use.
            table = jnp.pad(table, ((0, v_pad - V), (0, e_pad - E)))
        table_bytes = v_pad * e_pad * itemsize
        ids_spec = pl.BlockSpec((tok_block,), lambda i: (i,),
                                memory_space=pltpu.MemorySpace.SMEM)

        def run(single_buffer):
            bufs = 1 if (single_buffer and single_buffer_ok) else 2
            needed = (table_bytes * bufs
                      + 2 * tok_block * e_pad * itemsize    # output tiles
                      + 8 * e_pad * itemsize                # staging tile
                      + (4 << 20))
            vmem_limit = int(min(budget, max(needed, 32 << 20)))
            return pl.pallas_call(
                _row_gather_kernel,
                out_shape=jax.ShapeDtypeStruct((n_tok_pad, e_pad), out_dtype),
                grid=(n_blocks,),
                in_specs=[ids_spec,
                          _resident_table_spec((v_pad, e_pad), single_buffer)],
                out_specs=pl.BlockSpec((tok_block, e_pad), lambda i: (i, 0)),
                scratch_shapes=[pltpu.VMEM((8, e_pad), out_dtype)],
                compiler_params=pltpu.CompilerParams(
                    dimension_semantics=dims, vmem_limit_bytes=vmem_limit),
            )(flat_ids, table)

        try:
            out_flat = run(True)
        except Exception:
            out_flat = run(False)
        return out_flat[:n_tok, :E].reshape(*lead_shape, E)

    # ---- Path 3: table stays in HBM, per-row DMA gather ---------------------
    # Moves only n_tok*E bytes over HBM and works for tables that do not fit
    # VMEM at all (e.g. v7x's 64 MiB per-TC VMEM). No table padding needed.
    ids_spec = pl.BlockSpec((tok_block,), lambda i: (i,),
                            memory_space=pltpu.MemorySpace.SMEM)
    vmem_limit = int(min(budget,
                         max(2 * tok_block * E * itemsize + (4 << 20),
                             32 << 20)))
    out_flat = pl.pallas_call(
        _hbm_row_gather_kernel,
        out_shape=jax.ShapeDtypeStruct((n_tok_pad, E), out_dtype),
        grid=(n_blocks,),
        in_specs=[ids_spec, pl.BlockSpec(memory_space=pl.ANY)],
        out_specs=pl.BlockSpec((tok_block, E), lambda i: (i, 0)),
        scratch_shapes=[pltpu.SemaphoreType.DMA((_DMA_DEPTH,))],
        compiler_params=pltpu.CompilerParams(
            dimension_semantics=dims, vmem_limit_bytes=vmem_limit),
    )(flat_ids, embedding_table)
    return out_flat[:n_tok, :].reshape(*lead_shape, E)


if __name__ == "__main__":
    key = jax.random.PRNGKey(0)
    k_emb, k_ids = jax.random.split(key)

    def run_and_check(vocab, embed, batch, seq, **kwargs):
        # Deterministic init matching torch.nn.init.normal_(mean=0, std=0.02).
        emb = 0.02 * jax.random.normal(k_emb, (vocab, embed), dtype=jnp.float32)
        ids = jax.random.randint(k_ids, (batch, seq), 0, vocab, dtype=jnp.int32)
        out = jax.block_until_ready(word2vec_forward(ids, emb, **kwargs))
        ref = jnp.take(emb, ids, axis=0)
        assert out.shape == (batch, seq, embed)
        assert out.dtype == emb.dtype
        assert jnp.allclose(out, ref, atol=1e-5, rtol=1e-4)

    # Path 1: small vocab -> one-hot MXU gather (E padding/slicing exercised).
    run_and_check(64, 48, 2, 8)
    # Path 2: VMEM-resident table + staged row gather.
    run_and_check(64, 48, 2, 8, onehot_vocab_limit=0)
    # Path 3: sparse lookup of a larger vocab -> HBM row-DMA gather fallback.
    run_and_check(640, 128, 2, 8)

    print("KERNEL_OK")
</pallas_src>

<mosaic_0001>
module attributes {stable_mosaic.version = 11 : i64} {
  func.func @_onehot_gather_kernel(%arg0: i32, %arg1: memref<256x1xi32, #tpu.memory_space<vmem>>, %arg2: memref<128x128xf32, #tpu.memory_space<vmem>>, %arg3: memref<256x128xf32, #tpu.memory_space<vmem>>) attributes {dimension_semantics = [#tpu.dimension_semantics<parallel>], iteration_bounds = array<i64: 1>, scalar_prefetch = 0 : i64, scratch_operands = 0 : i64, tpu.core_type = #tpu.core_type<tc>, window_params = [{transform_indices = @transform_0, window_bounds = array<i64: 256, 1>}, {pipeline_mode = #tpu.pipeline_mode<synchronous>, transform_indices = @transform_1, window_bounds = array<i64: 128, 128>}, {transform_indices = @transform_2, window_bounds = array<i64: 256, 128>}]} {
    %0 = tpu.iota {dimensions = array<i32: 1>} : vector<256x128xi32>
    %c0 = arith.constant 0 : index
    %c0_0 = arith.constant 0 : index
    %1 = vector.load %arg1[%c0, %c0_0] : memref<256x1xi32, #tpu.memory_space<vmem>>, vector<256x1xi32>
    %2 = vector.broadcast %1 : vector<256x1xi32> to vector<256x128xi32>
    %3 = arith.cmpi eq, %2, %0 : vector<256x128xi32>
    %4 = arith.extui %3 : vector<256x128xi1> to vector<256x128xi32>
    %5 = arith.sitofp %4 : vector<256x128xi32> to vector<256x128xf32>
    %c0_1 = arith.constant 0 : index
    %c0_2 = arith.constant 0 : index
    %6 = vector.load %arg2[%c0_1, %c0_2] : memref<128x128xf32, #tpu.memory_space<vmem>>, vector<128x128xf32>
    %cst = arith.constant dense<0.000000e+00> : vector<256x128xf32>
    %7 = tpu.matmul %5, %6, %cst {dimension_numbers = #tpu.dot_dimension_numbers<[1], [0], [0], [1], [0, 0, 1, 1], [], []>} : vector<256x128xf32>, vector<128x128xf32>, vector<256x128xf32> -> vector<256x128xf32>
    %c0_3 = arith.constant 0 : index
    %c0_4 = arith.constant 0 : index
    %8 = vector.load %arg3[%c0_3, %c0_4] : memref<256x128xf32, #tpu.memory_space<vmem>>, vector<256x128xf32>
    tpu.vector_store %arg3[%c0_3, %c0_4], %7 {strides = array<i32>} : memref<256x128xf32, #tpu.memory_space<vmem>>, vector<256x128xf32>,
    return
  }
  func.func @transform_0(%arg0: i32) -> (i32, i32) {
    %c0_i32 = arith.constant 0 : i32
    %c0_i32_0 = arith.constant 0 : i32
    return %arg0, %c0_i32 : i32, i32
  }
  func.func @transform_1(%arg0: i32) -> (i32, i32) {
    %c0_i32 = arith.constant 0 : i32
    %c0_i32_0 = arith.constant 0 : i32
    %c0_i32_1 = arith.constant 0 : i32
    return %c0_i32, %c0_i32_0 : i32, i32
  }
  func.func @transform_2(%arg0: i32) -> (i32, i32) {
    %c0_i32 = arith.constant 0 : i32
    %c0_i32_0 = arith.constant 0 : i32
    return %arg0, %c0_i32 : i32, i32
  }
}

module attributes {stable_mosaic.version = 11 : i64} {
  func.func @_onehot_gather_kernel(%arg0: i32, %arg1: memref<256x1xi32, #tpu.memory_space<vmem>>, %arg2: memref<128x128xf32, #tpu.memory_space<vmem>>, %arg3: memref<256x128xf32, #tpu.memory_space<vmem>>) attributes {dimension_semantics = [#tpu.dimension_semantics<parallel>], iteration_bounds = array<i64: 1>, scalar_prefetch = 0 : i64, scratch_operands = 0 : i64, tpu.core_type = #tpu.core_type<tc>, window_params = [{transform_indices = @transform_0, window_bounds = array<i64: 256, 1>}, {pipeline_mode = #tpu.pipeline_mode<synchronous>, transform_indices = @transform_1, window_bounds = array<i64: 128, 128>}, {transform_indices = @transform_2, window_bounds = array<i64: 256, 128>}]} {
    %0 = tpu.iota {dimensions = array<i32: 1>} : vector<256x128xi32>
    %c0 = arith.constant 0 : index
    %c0_0 = arith.constant 0 : index
    %1 = vector.load %arg1[%c0, %c0_0] : memref<256x1xi32, #tpu.memory_space<vmem>>, vector<256x1xi32>
    %2 = vector.broadcast %1 : vector<256x1xi32> to vector<256x128xi32>
    %3 = arith.cmpi eq, %2, %0 : vector<256x128xi32>
    %4 = arith.extui %3 : vector<256x128xi1> to vector<256x128xi32>
    %5 = arith.sitofp %4 : vector<256x128xi32> to vector<256x128xf32>
    %c0_1 = arith.constant 0 : index
    %c0_2 = arith.constant 0 : index
    %6 = vector.load %arg2[%c0_1, %c0_2] : memref<128x128xf32, #tpu.memory_space<vmem>>, vector<128x128xf32>
    %cst = arith.constant dense<0.000000e+00> : vector<256x128xf32>
    %7 = tpu.matmul %5, %6, %cst {dimension_numbers = #tpu.dot_dimension_numbers<[1], [0], [0], [1], [0, 0, 1, 1], [], []>} : vector<256x128xf32>, vector<128x128xf32>, vector<256x128xf32> -> vector<256x128xf32>
    %c0_3 = arith.constant 0 : index
    %c0_4 = arith.constant 0 : index
    %8 = vector.load %arg3[%c0_3, %c0_4] : memref<256x128xf32, #tpu.memory_space<vmem>>, vector<256x128xf32>
    tpu.vector_store %arg3[%c0_3, %c0_4], %7 {strides = array<i32>} : memref<256x128xf32, #tpu.memory_space<vmem>>, vector<256x128xf32>,
    return
  }
  func.func @transform_0(%arg0: i32) -> (i32, i32) {
    %c0_i32 = arith.constant 0 : i32
    %c0_i32_0 = arith.constant 0 : i32
    return %arg0, %c0_i32 : i32, i32
  }
  func.func @transform_1(%arg0: i32) -> (i32, i32) {
    %c0_i32 = arith.constant 0 : i32
    %c0_i32_0 = arith.constant 0 : i32
    %c0_i32_1 = arith.constant 0 : i32
    return %c0_i32, %c0_i32_0 : i32, i32
  }
  func.func @transform_2(%arg0: i32) -> (i32, i32) {
    %c0_i32 = arith.constant 0 : i32
    %c0_i32_0 = arith.constant 0 : i32
    return %arg0, %c0_i32 : i32, i32
  }
}

</mosaic_0001>

<bundles_post_ra>
// kernel: tpu_custom_call.1
= control target key start
LH: loop header
LB: loop body
LE: loop exit
PB: predicated region body
PF: predicated region fallthrough
CT: control target
= control target key end

     0   :  { %v798_v2 = vmov 0   ;;  %s1040_s0 = inlined_call_operand.vmem [shape: s32[256,1], index: 0, kind: input, shape index: {}]   ;;  %s1041_s1 = inlined_call_operand.vmem [shape: f32[128,128], index: 1, kind: input, shape index: {}]   ;;  %s1042_s2 = inlined_call_operand.hbm [shape: f32[256,128], index: 2, kind: output, shape index: {}]  }
   0x1   :  { %v15_v0 = vld [vmem:[%s1040_s0 + $0x8] sm:$0xff]  ;;  %v14_v1 = vld [vmem:[%s1040_s0] sm:$0xff]  ;;  %773 = vset.pattern.permute.xlu1 %v798_v2  ;;  %772 = vset.pattern.permute.xlu0 %v798_v2  ;;  %v32_v5 = vld [vmem:[%s1040_s0 + $0x90] sm:$0xff] }
   0x2   :  { %50 = vperm.xlu1 %773, %v15_v0   ;;  %47 = vperm.xlu0 %772, %v14_v1   ;;  %v31_v3 = vld [vmem:[%s1040_s0 + $0x88] sm:$0xff]  ;;  %v30_v4 = vld [vmem:[%s1040_s0 + $0x80] sm:$0xff]  ;;  %v16_v6 = vld [vmem:[%s1040_s0 + $0x10] sm:$0xff] }
   0x3   :  { %v33_v7 = vld [vmem:[%s1040_s0 + $0x98] sm:$0xff]  ;;  %v238_v9 = vld [vmem:[%s1041_s1] sm:$0xff]  ;;  %v239_v10 = vld [vmem:[%s1041_s1 + $0x8] sm:$0xff] }
   0x4   :  { %v17_v8 = vld [vmem:[%s1040_s0 + $0x18] sm:$0xff]  ;;  %v240_v11 = vld [vmem:[%s1041_s1 + $0x10] sm:$0xff]  ;;  %v719_v13 = vpack.c.bf16 %v239_v10, %v238_v9  ;;  %v242_v15 = vld [vmem:[%s1041_s1 + $0x20] sm:$0xff] }
   0x5   :  { %v241_v12 = vld [vmem:[%s1041_s1 + $0x18] sm:$0xff]  ;;  %v243_v16 = vld [vmem:[%s1041_s1 + $0x28] sm:$0xff]  ;;  %v34_v17 = vld [vmem:[%s1040_s0 + $0xa0] sm:$0xff] }
   0x6   :  { %98 = vperm.xlu1 %773, %v31_v3   ;;  %95 = vperm.xlu0 %772, %v30_v4   ;;  %v723_v14 = vpack.c.bf16 %v241_v12, %v240_v11  ;;  %v18_v18 = vld [vmem:[%s1040_s0 + $0x20] sm:$0xff] }
   0x7   :  { %720 = vmatprep.subr.bf16.mxu0 %v719_v13  ;;  %751 = vmatprep.subr.bf16.mxu1 %v719_v13 }
   0x8   :  { %722 = vmatpush3.bf16.msra.mxu0 %v719_v13  ;;  %759 = vmatpush3.bf16.msra.mxu1 %v719_v13 }
   0xa   :  { %101 = vperm.xlu1 %773, %v32_v5   ;;  %53 = vperm.xlu0 %772, %v16_v6  }
   0xe   :  { %104 = vperm.xlu1 %773, %v33_v7   ;;  %56 = vperm.xlu0 %772, %v17_v8  }
   0xf   :  { %7 = vsyncpa [#allocation3], 0  ;;  %724 = vmatprep.subr.bf16.mxu0 %v723_v14  ;;  %752 = vmatprep.subr.bf16.mxu1 %v723_v14  ;;  %v727_v19 = vpack.c.bf16 %v243_v16, %v242_v15  ;;  %v244_v20 = vld [vmem:[%s1041_s1 + $0x30] sm:$0xff]  ;;  %v245_v21 = vld [vmem:[%s1041_s1 + $0x38] sm:$0xff]  ;;  %v12_v57 = vlaneseq  ;;  %v799_v61 = vmov 1.0  }
  0x10   :  { %v35_v22 = vld [vmem:[%s1040_s0 + $0xa8] sm:$0xff]  ;;  %726 = vmatpush3.bf16.msra.mxu0 %v723_v14  ;;  %760 = vmatpush3.bf16.msra.mxu1 %v723_v14  ;;  %v731_v24 = vpack.c.bf16 %v245_v21, %v244_v20  ;;  %v246_v25 = vld [vmem:[%s1041_s1 + $0x40] sm:$0xff]  ;;  %v36_v27 = vld [vmem:[%s1040_s0 + $0xb0] sm:$0xff] }
  0x11   :  { %v19_v23 = vld [vmem:[%s1040_s0 + $0x28] sm:$0xff]  ;;  %728 = vmatprep.subr.bf16.mxu0 %v727_v19  ;;  %753 = vmatprep.subr.bf16.mxu1 %v727_v19  ;;  %v20_v28 = vld [vmem:[%s1040_s0 + $0x30] sm:$0xff]  ;;  %v249_v31 = vld [vmem:[%s1041_s1 + $0x58] sm:$0xff]  ;;  %v962_v58 = vand.u32 127, %v12_v57 }
  0x12   :  { %107 = vperm.xlu1 %773, %v34_v17   ;;  %59 = vperm.xlu0 %772, %v18_v18   ;;  %v247_v26 = vld [vmem:[%s1041_s1 + $0x48] sm:$0xff]  ;;  %v248_v30 = vld [vmem:[%s1041_s1 + $0x50] sm:$0xff]  ;;  %v37_v32 = vld [vmem:[%s1040_s0 + $0xb8] sm:$0xff] }
  0x13   :  { %v735_v29 = vpack.c.bf16 %v247_v26, %v246_v25  ;;  %v21_v33 = vld [vmem:[%s1040_s0 + $0x38] sm:$0xff]  ;;  %v739_v34 = vpack.c.bf16 %v249_v31, %v248_v30  ;;  %v250_v35 = vld [vmem:[%s1041_s1 + $0x60] sm:$0xff]  ;;  %v251_v36 = vld [vmem:[%s1041_s1 + $0x68] sm:$0xff] }
  0x14   :  { %730 = vmatpush3.bf16.msra.mxu0 %v727_v19  ;;  %761 = vmatpush3.bf16.msra.mxu1 %v727_v19  ;;  %v38_v37 = vld [vmem:[%s1040_s0 + $0xc0] sm:$0xff]  ;;  %v743_v39 = vpack.c.bf16 %v251_v36, %v250_v35  ;;  %v252_v40 = vld [vmem:[%s1041_s1 + $0x70] sm:$0xff]  ;;  %v253_v41 = vld [vmem:[%s1041_s1 + $0x78] sm:$0xff] }
  0x15   :  { %732 = vmatprep.subr.bf16.mxu0 %v731_v24  ;;  %754 = vmatprep.subr.bf16.mxu1 %v731_v24  ;;  %v22_v38 = vld [vmem:[%s1040_s0 + $0x40] sm:$0xff]  ;;  %v39_v42 = vld [vmem:[%s1040_s0 + $0xc8] sm:$0xff]  ;;  %v747_v44 = vpack.c.bf16 %v253_v41, %v252_v40  ;;  %v40_v45 = vld [vmem:[%s1040_s0 + $0xd0] sm:$0xff] }
  0x16   :  { %110 = vperm.xlu1 %773, %v35_v22   ;;  %62 = vperm.xlu0 %772, %v19_v23   ;;  %v23_v43 = vld [vmem:[%s1040_s0 + $0x48] sm:$0xff]  ;;  %v24_v46 = vld [vmem:[%s1040_s0 + $0x50] sm:$0xff]  ;;  %v41_v47 = vld [vmem:[%s1040_s0 + $0xd8] sm:$0xff] }
  0x17   :  { %v25_v48 = vld [vmem:[%s1040_s0 + $0x58] sm:$0xff]  ;;  %v42_v49 = vld [vmem:[%s1040_s0 + $0xe0] sm:$0xff]  ;;  %v43_v51 = vld [vmem:[%s1040_s0 + $0xe8] sm:$0xff] }
  0x18   :  { %734 = vmatpush3.bf16.msra.mxu0 %v731_v24  ;;  %762 = vmatpush3.bf16.msra.mxu1 %v731_v24  ;;  %v26_v50 = vld [vmem:[%s1040_s0 + $0x60] sm:$0xff]  ;;  %v27_v52 = vld [vmem:[%s1040_s0 + $0x68] sm:$0xff]  ;;  %v44_v53 = vld [vmem:[%s1040_s0 + $0xf0] sm:$0xff] }
  0x19   :  { %736 = vmatprep.subr.bf16.mxu0 %v735_v29  ;;  %755 = vmatprep.subr.bf16.mxu1 %v735_v29  ;;  %v28_v54 = vld [vmem:[%s1040_s0 + $0x70] sm:$0xff]  ;;  %v45_v55 = vld [vmem:[%s1040_s0 + $0xf8] sm:$0xff] }
  0x1a   :  { %113 = vperm.xlu1 %773, %v36_v27   ;;  %65 = vperm.xlu0 %772, %v20_v28   ;;  %v29_v56 = vld [vmem:[%s1040_s0 + $0x78] sm:$0xff]  ;;  %s800_s0 = smov [#allocation2]  }
  0x1b   :  { %s516_s20 = sshll.u32 %s800_s0, 4  ;;  %s517_s20 = int_to_ptr.vmem [resolvable:$true] %s516_s20 }
  0x1c   :  { %738 = vmatpush3.bf16.msra.mxu0 %v735_v29  ;;  %763 = vmatpush3.bf16.msra.mxu1 %v735_v29  ;;  %s774_s21 = scalar_lea.vmem %s517_s20, 4096  ;;  %p779_p1 = scmp.lt.s32.totalorder %s517_s20, %s517_s20 }
  0x1d   :  { %740 = vmatprep.subr.bf16.mxu0 %v739_v34  ;;  %756 = vmatprep.subr.bf16.mxu1 %v739_v34  ;;  %p775_p0 = scmp.ne.s32.totalorder %s517_s20, %s774_s21  ;;  %p780_p2 = scmp.lt.s32.totalorder %s774_s21, %s774_s21 }
  0x1e   :  { %116 = vperm.xlu1 %773, %v37_v32   ;;  %68 = vperm.xlu0 %772, %v21_v33  }
  0x1f   :  { %p781_p3 = por %p780_p2, %p779_p1 }
  0x20   :  { %742 = vmatpush3.bf16.msra.mxu0 %v739_v34  ;;  %764 = vmatpush3.bf16.msra.mxu1 %v739_v34 }
  0x21   :  { %744 = vmatprep.subr.bf16.mxu0 %v743_v39  ;;  %757 = vmatprep.subr.bf16.mxu1 %v743_v39  ;;  %p782_p4 = pnand %p781_p3, %p775_p0 }
  0x22   :  { %119 = vperm.xlu1 %773, %v38_v37   ;;  %71 = vperm.xlu0 %772, %v22_v38  }
  0x24   :  { %746 = vmatpush3.bf16.msra.mxu0 %v743_v39  ;;  %765 = vmatpush3.bf16.msra.mxu1 %v743_v39 }
  0x25   :  { %748 = vmatprep.subr.bf16.mxu0 %v747_v44  ;;  %758 = vmatprep.subr.bf16.mxu1 %v747_v44 }
  0x26   :  { %122 = vperm.xlu1 %773, %v39_v42   ;;  %74 = vperm.xlu0 %772, %v23_v43  }
  0x28   :  { %750 = vmatpush3.bf16.msra.mxu0 %v747_v44  ;;  %766 = vmatpush3.bf16.msra.mxu1 %v747_v44 }
  0x2a   :  { %125 = vperm.xlu1 %773, %v40_v45   ;;  %77 = vperm.xlu0 %772, %v24_v46  }
  0x2e   :  { %128 = vperm.xlu1 %773, %v41_v47   ;;  %80 = vperm.xlu0 %772, %v25_v48  }
  0x32   :  { %131 = vperm.xlu1 %773, %v42_v49   ;;  %83 = vperm.xlu0 %772, %v26_v50  }
  0x36   :  { %134 = vperm.xlu1 %773, %v43_v51   ;;  %86 = vperm.xlu0 %772, %v27_v52  }
  0x3a   :  { %137 = vperm.xlu1 %773, %v44_v53   ;;  %89 = vperm.xlu0 %772, %v28_v54  }
  0x3e   :  { %140 = vperm.xlu1 %773, %v45_v55   ;;  %92 = vperm.xlu0 %772, %v29_v56  }
  0x81   :  { %v51_v59 = vpop.permute.xlu1 %50  ;;  %v48_v60 = vpop.permute.xlu0 %47 }
  0x82   :  { %vm143_vm0 = vcmp.eq.s32.totalorder %v51_v59, %v962_v58  ;;  %vm142_vm1 = vcmp.eq.s32.totalorder %v48_v60, %v962_v58 }
  0x83   :  { %671 = vmatprep.mubr.msk.f32.mxu0 %vm142_vm1, %v799_v61 }
  0x84   :  { %672 = vmatmul.mubr.msk.f32.vlgmr.msra.gmra.mrb[0].mxu0 %vm143_vm0, %v799_v61 }
  0x85   :  { %v99_v62 = vpop.permute.xlu1 %98  ;;  %v96_v63 = vpop.permute.xlu0 %95 }
  0x86   :  { %vm159_vm2 = vcmp.eq.s32.totalorder %v99_v62, %v962_v58  ;;  %vm158_vm3 = vcmp.eq.s32.totalorder %v96_v63, %v962_v58 }
  0x87   :  { %695 = vmatprep.mubr.msk.f32.mxu1 %vm158_vm3, %v799_v61 }
  0x88   :  { %696 = vmatmul.mubr.msk.f32.vlgmr.msra.gmra.mrb[0].mxu1 %vm159_vm2, %v799_v61 }
  0x89   :  { %v102_v0 = vpop.permute.xlu1 %101  ;;  %v54_v1 = vpop.permute.xlu0 %53 }
  0x8a   :  { %vm160_vm4 = vcmp.eq.s32.totalorder %v102_v0, %v962_v58  ;;  %vm144_vm5 = vcmp.eq.s32.totalorder %v54_v1, %v962_v58 }
  0x8b   :  { %674 = vmatprep.mubr.msk.f32.mxu0 %vm144_vm5, %v799_v61  ;;  %698 = vmatprep.mubr.msk.f32.mxu1 %vm160_vm4, %v799_v61 }
  0x8d   :  { %v105_v2 = vpop.permute.xlu1 %104  ;;  %v57_v3 = vpop.permute.xlu0 %56 }
  0x8e   :  { %vm161_vm6 = vcmp.eq.s32.totalorder %v105_v2, %v962_v58  ;;  %vm145_vm7 = vcmp.eq.s32.totalorder %v57_v3, %v962_v58 }
  0x8f   :  { %675 = vmatmul.mubr.msk.f32.gmra.mrb[2].mxu0 %vm145_vm7, %v799_v61  ;;  %699 = vmatmul.mubr.msk.f32.gmra.mrb[2].mxu1 %vm161_vm6, %v799_v61 }
  0x91   :  { %v108_v4 = vpop.permute.xlu1 %107  ;;  %v60_v5 = vpop.permute.xlu0 %59 }
  0x92   :  { %vm162_vm8 = vcmp.eq.s32.totalorder %v108_v4, %v962_v58  ;;  %vm146_vm9 = vcmp.eq.s32.totalorder %v60_v5, %v962_v58 }
  0x93   :  { %677 = vmatprep.mubr.msk.f32.mxu0 %vm146_vm9, %v799_v61  ;;  %701 = vmatprep.mubr.msk.f32.mxu1 %vm162_vm8, %v799_v61 }
  0x95   :  { %v111_v6 = vpop.permute.xlu1 %110  ;;  %v63_v7 = vpop.permute.xlu0 %62 }
  0x96   :  { %vm163_vm10 = vcmp.eq.s32.totalorder %v111_v6, %v962_v58  ;;  %vm147_vm11 = vcmp.eq.s32.totalorder %v63_v7, %v962_v58 }
  0x97   :  { %678 = vmatmul.mubr.msk.f32.gmra.mrb[4].mxu0 %vm147_vm11, %v799_v61  ;;  %702 = vmatmul.mubr.msk.f32.gmra.mrb[4].mxu1 %vm163_vm10, %v799_v61 }
  0x99   :  { %v114_v8 = vpop.permute.xlu1 %113  ;;  %v66_v9 = vpop.permute.xlu0 %65 }
  0x9a   :  { %vm164_vm12 = vcmp.eq.s32.totalorder %v114_v8, %v962_v58  ;;  %vm148_vm13 = vcmp.eq.s32.totalorder %v66_v9, %v962_v58 }
  0x9b   :  { %680 = vmatprep.mubr.msk.f32.mxu0 %vm148_vm13, %v799_v61  ;;  %704 = vmatprep.mubr.msk.f32.mxu1 %vm164_vm12, %v799_v61 }
  0x9d   :  { %v117_v10 = vpop.permute.xlu1 %116  ;;  %v69_v11 = vpop.permute.xlu0 %68 }
  0x9e   :  { %vm165_vm14 = vcmp.eq.s32.totalorder %v117_v10, %v962_v58  ;;  %vm149_vm15 = vcmp.eq.s32.totalorder %v69_v11, %v962_v58 }
  0x9f   :  { %681 = vmatmul.mubr.msk.f32.gmra.mrb[6].mxu0 %vm149_vm15, %v799_v61  ;;  %705 = vmatmul.mubr.msk.f32.gmra.mrb[6].mxu1 %vm165_vm14, %v799_v61 }
  0xa1   :  { %v120_v12 = vpop.permute.xlu1 %119  ;;  %v72_v13 = vpop.permute.xlu0 %71 }
  0xa2   :  { %vm166_vm0 = vcmp.eq.s32.totalorder %v120_v12, %v962_v58  ;;  %vm150_vm1 = vcmp.eq.s32.totalorder %v72_v13, %v962_v58 }
  0xa3   :  { %683 = vmatprep.mubr.msk.f32.mxu0 %vm150_vm1, %v799_v61  ;;  %707 = vmatprep.mubr.msk.f32.mxu1 %vm166_vm0, %v799_v61 }
  0xa5   :  { %v123_v14 = vpop.permute.xlu1 %122  ;;  %v75_v15 = vpop.permute.xlu0 %74 }
  0xa6   :  { %vm167_vm2 = vcmp.eq.s32.totalorder %v123_v14, %v962_v58  ;;  %vm151_vm3 = vcmp.eq.s32.totalorder %v75_v15, %v962_v58 }
  0xa7   :  { %684 = vmatmul.mubr.msk.f32.gmra.mrb[8].mxu0 %vm151_vm3, %v799_v61  ;;  %708 = vmatmul.mubr.msk.f32.gmra.mrb[8].mxu1 %vm167_vm2, %v799_v61 }
  0xa9   :  { %v126_v16 = vpop.permute.xlu1 %125  ;;  %v78_v17 = vpop.permute.xlu0 %77 }
  0xaa   :  { %vm168_vm4 = vcmp.eq.s32.totalorder %v126_v16, %v962_v58  ;;  %vm152_vm5 = vcmp.eq.s32.totalorder %v78_v17, %v962_v58 }
  0xab   :  { %686 = vmatprep.mubr.msk.f32.mxu0 %vm152_vm5, %v799_v61  ;;  %710 = vmatprep.mubr.msk.f32.mxu1 %vm168_vm4, %v799_v61 }
  0xad   :  { %v129_v18 = vpop.permute.xlu1 %128  ;;  %v81_v19 = vpop.permute.xlu0 %80 }
  0xae   :  { %vm169_vm6 = vcmp.eq.s32.totalorder %v129_v18, %v962_v58  ;;  %vm153_vm7 = vcmp.eq.s32.totalorder %v81_v19, %v962_v58 }
  0xaf   :  { %687 = vmatmul.mubr.msk.f32.gmra.mrb[10].mxu0 %vm153_vm7, %v799_v61  ;;  %711 = vmatmul.mubr.msk.f32.gmra.mrb[10].mxu1 %vm169_vm6, %v799_v61 }
  0xb1   :  { %v132_v20 = vpop.permute.xlu1 %131  ;;  %v84_v21 = vpop.permute.xlu0 %83 }
  0xb2   :  { %vm170_vm8 = vcmp.eq.s32.totalorder %v132_v20, %v962_v58  ;;  %vm154_vm9 = vcmp.eq.s32.totalorder %v84_v21, %v962_v58 }
  0xb3   :  { %689 = vmatprep.mubr.msk.f32.mxu0 %vm154_vm9, %v799_v61  ;;  %713 = vmatprep.mubr.msk.f32.mxu1 %vm170_vm8, %v799_v61 }
  0xb5   :  { %v135_v22 = vpop.permute.xlu1 %134  ;;  %v87_v23 = vpop.permute.xlu0 %86 }
  0xb6   :  { %vm171_vm10 = vcmp.eq.s32.totalorder %v135_v22, %v962_v58  ;;  %vm155_vm11 = vcmp.eq.s32.totalorder %v87_v23, %v962_v58 }
  0xb7   :  { %690 = vmatmul.mubr.msk.f32.gmra.mrb[12].mxu0 %vm155_vm11, %v799_v61  ;;  %714 = vmatmul.mubr.msk.f32.gmra.mrb[12].mxu1 %vm171_vm10, %v799_v61 }
  0xb9   :  { %v138_v24 = vpop.permute.xlu1 %137  ;;  %v90_v25 = vpop.permute.xlu0 %89 }
  0xba   :  { %vm172_vm12 = vcmp.eq.s32.totalorder %v138_v24, %v962_v58  ;;  %vm156_vm13 = vcmp.eq.s32.totalorder %v90_v25, %v962_v58 }
  0xbb   :  { %692 = vmatprep.mubr.msk.f32.mxu0 %vm156_vm13, %v799_v61  ;;  %716 = vmatprep.mubr.msk.f32.mxu1 %vm172_vm12, %v799_v61 }
  0xbd   :  { %v141_v26 = vpop.permute.xlu1 %140  ;;  %v93_v27 = vpop.permute.xlu0 %92 }
  0xbe   :  { %vm173_vm14 = vcmp.eq.s32.totalorder %v141_v26, %v962_v58  ;;  %vm157_vm15 = vcmp.eq.s32.totalorder %v93_v27, %v962_v58 }
  0xbf   :  { %693 = vmatmul.mubr.msk.f32.gmra.mrb[14].mxu0 %vm157_vm15, %v799_v61  ;;  %717 = vmatmul.mubr.msk.f32.gmra.mrb[14].mxu1 %vm173_vm14, %v799_v61 }
 0x157   :  { %v673_v28 = vpop.f32.mrb[0].mxu0 }
 0x158   :  { %480 = vst [vmem:[#allocation2 + $0x8] sm:$0xff] %v673_v28  ;;  %v320_v29 = vpop.f32.mrb[1].mxu0 }
 0x159   :  { %479 = vst [vmem:[#allocation2] sm:$0xff] %v320_v29 }
 0x15b   :  { %v697_v30 = vpop.f32.mrb[0].mxu1 }
 0x15c   :  { %496 = vst [vmem:[#allocation2 + $0x88] sm:$0xff] %v697_v30  ;;  %v400_v31 = vpop.f32.mrb[1].mxu1 }
 0x15d   :  { %495 = vst [vmem:[#allocation2 + $0x80] sm:$0xff] %v400_v31 }
 0x162   :  { %v676_v32 = vpop.f32.mrb[2].mxu0  ;;  %v700_v33 = vpop.f32.mrb[2].mxu1 }
 0x163   :  { %482 = vst [vmem:[#allocation2 + $0x18] sm:$0xff] %v676_v32  ;;  %498 = vst [vmem:[#allocation2 + $0x98] sm:$0xff] %v700_v33  ;;  %v330_v34 = vpop.f32.mrb[3].mxu0  ;;  %v410_v35 = vpop.f32.mrb[3].mxu1 }
 0x164   :  { %481 = vst [vmem:[#allocation2 + $0x10] sm:$0xff] %v330_v34  ;;  %497 = vst [vmem:[#allocation2 + $0x90] sm:$0xff] %v410_v35 }
 0x16a   :  { %v679_v36 = vpop.f32.mrb[4].mxu0  ;;  %v703_v37 = vpop.f32.mrb[4].mxu1 }
 0x16b   :  { %484 = vst [vmem:[#allocation2 + $0x28] sm:$0xff] %v679_v36  ;;  %500 = vst [vmem:[#allocation2 + $0xa8] sm:$0xff] %v703_v37  ;;  %v340_v38 = vpop.f32.mrb[5].mxu0  ;;  %v420_v39 = vpop.f32.mrb[5].mxu1 }
 0x16c   :  { %483 = vst [vmem:[#allocation2 + $0x20] sm:$0xff] %v340_v38  ;;  %499 = vst [vmem:[#allocation2 + $0xa0] sm:$0xff] %v420_v39 }
 0x172   :  { %v682_v40 = vpop.f32.mrb[6].mxu0  ;;  %v706_v41 = vpop.f32.mrb[6].mxu1 }
 0x173   :  { %486 = vst [vmem:[#allocation2 + $0x38] sm:$0xff] %v682_v40  ;;  %502 = vst [vmem:[#allocation2 + $0xb8] sm:$0xff] %v706_v41  ;;  %v350_v42 = vpop.f32.mrb[7].mxu0  ;;  %v430_v43 = vpop.f32.mrb[7].mxu1 }
 0x174   :  { %485 = vst [vmem:[#allocation2 + $0x30] sm:$0xff] %v350_v42  ;;  %501 = vst [vmem:[#allocation2 + $0xb0] sm:$0xff] %v430_v43 }
 0x17a   :  { %v685_v44 = vpop.f32.mrb[8].mxu0  ;;  %v709_v45 = vpop.f32.mrb[8].mxu1 }
 0x17b   :  { %488 = vst [vmem:[#allocation2 + $0x48] sm:$0xff] %v685_v44  ;;  %504 = vst [vmem:[#allocation2 + $0xc8] sm:$0xff] %v709_v45  ;;  %v360_v46 = vpop.f32.mrb[9].mxu0  ;;  %v440_v47 = vpop.f32.mrb[9].mxu1 }
 0x17c   :  { %487 = vst [vmem:[#allocation2 + $0x40] sm:$0xff] %v360_v46  ;;  %503 = vst [vmem:[#allocation2 + $0xc0] sm:$0xff] %v440_v47 }
 0x182   :  { %v688_v48 = vpop.f32.mrb[10].mxu0  ;;  %v712_v49 = vpop.f32.mrb[10].mxu1 }
 0x183   :  { %490 = vst [vmem:[#allocation2 + $0x58] sm:$0xff] %v688_v48  ;;  %506 = vst [vmem:[#allocation2 + $0xd8] sm:$0xff] %v712_v49  ;;  %v370_v50 = vpop.f32.mrb[11].mxu0  ;;  %v450_v51 = vpop.f32.mrb[11].mxu1 }
 0x184   :  { %489 = vst [vmem:[#allocation2 + $0x50] sm:$0xff] %v370_v50  ;;  %505 = vst [vmem:[#allocation2 + $0xd0] sm:$0xff] %v450_v51 }
 0x18a   :  { %v691_v52 = vpop.f32.mrb[12].mxu0  ;;  %v715_v53 = vpop.f32.mrb[12].mxu1 }
 0x18b   :  { %492 = vst [vmem:[#allocation2 + $0x68] sm:$0xff] %v691_v52  ;;  %508 = vst [vmem:[#allocation2 + $0xe8] sm:$0xff] %v715_v53  ;;  %v380_v54 = vpop.f32.mrb[13].mxu0  ;;  %v460_v55 = vpop.f32.mrb[13].mxu1 }
 0x18c   :  { %491 = vst [vmem:[#allocation2 + $0x60] sm:$0xff] %v380_v54  ;;  %507 = vst [vmem:[#allocation2 + $0xe0] sm:$0xff] %v460_v55 }
 0x192   :  { %v694_v56 = vpop.f32.mrb[14].mxu0  ;;  %v718_v57 = vpop.f32.mrb[14].mxu1 }
 0x193   :  { %494 = vst [vmem:[#allocation2 + $0x78] sm:$0xff] %v694_v56  ;;  %510 = vst [vmem:[#allocation2 + $0xf8] sm:$0xff] %v718_v57  ;;  %v390_v58 = vpop.f32.mrb[15].mxu0  ;;  %v470_v59 = vpop.f32.mrb[15].mxu1 }
 0x194   :  { %493 = vst [vmem:[#allocation2 + $0x70] sm:$0xff] %v390_v58  ;;  %509 = vst [vmem:[#allocation2 + $0xf0] sm:$0xff] %v470_v59 }
 0x195   :  { %785 = shalt.err (!%p782_p4)
}
 0x196   :  { %s786_s24 = scalar_lea.hbm %s1042_s2, 4096 }
 0x197   :  { %p787_p5 = scmp.ne.s32.totalorder %s1042_s2, %s786_s24  ;;  %p790_p6 = scmp.lt.u32.totalorder %s786_s24, %s1042_s2 }
 0x199   :  { %p792_p7 = pnand %p790_p6, %p787_p5 }
 0x19b   :  { %795 = shalt.err (!%p792_p7)
}
 0x19c   :  { %s801_s28 = smov 128   ;;  %s802_s29 = smov 8  }
 0x19d   :  { %522 = dma.vmem_to_hbm [thread:$0]  %s517_s20, 4096, %s1042_s2, [#allocation3], %s801_s28, %s801_s28, %s802_s29  }
 0x19e   :  { %796 = dma.done.wait [#allocation3], 4096  }
 0x19f   :  { %797 = vsyncadd [#allocation3], 4294963200 }
 0x1a0   :  { %526 = vsyncpa [#allocation3], 1 }

// kernel: tpu_custom_call.1
= control target key start
LH: loop header
LB: loop body
LE: loop exit
PB: predicated region body
PF: predicated region fallthrough
CT: control target
= control target key end

     0   :  { %v798_v2 = vmov 0   ;;  %s1040_s0 = inlined_call_operand.vmem [shape: s32[256,1], index: 0, kind: input, shape index: {}]   ;;  %s1041_s1 = inlined_call_operand.vmem [shape: f32[128,128], index: 1, kind: input, shape index: {}]   ;;  %s1042_s2 = inlined_call_operand.hbm [shape: f32[256,128], index: 2, kind: output, shape index: {}]  }
   0x1   :  { %v15_v0 = vld [vmem:[%s1040_s0 + $0x8] sm:$0xff]  ;;  %v14_v1 = vld [vmem:[%s1040_s0] sm:$0xff]  ;;  %773 = vset.pattern.permute.xlu1 %v798_v2  ;;  %772 = vset.pattern.permute.xlu0 %v798_v2  ;;  %v32_v5 = vld [vmem:[%s1040_s0 + $0x90] sm:$0xff] }
   0x2   :  { %50 = vperm.xlu1 %773, %v15_v0   ;;  %47 = vperm.xlu0 %772, %v14_v1   ;;  %v31_v3 = vld [vmem:[%s1040_s0 + $0x88] sm:$0xff]  ;;  %v30_v4 = vld [vmem:[%s1040_s0 + $0x80] sm:$0xff]  ;;  %v16_v6 = vld [vmem:[%s1040_s0 + $0x10] sm:$0xff] }
   0x3   :  { %v33_v7 = vld [vmem:[%s1040_s0 + $0x98] sm:$0xff]  ;;  %v238_v9 = vld [vmem:[%s1041_s1] sm:$0xff]  ;;  %v239_v10 = vld [vmem:[%s1041_s1 + $0x8] sm:$0xff] }
   0x4   :  { %v17_v8 = vld [vmem:[%s1040_s0 + $0x18] sm:$0xff]  ;;  %v240_v11 = vld [vmem:[%s1041_s1 + $0x10] sm:$0xff]  ;;  %v719_v13 = vpack.c.bf16 %v239_v10, %v238_v9  ;;  %v242_v15 = vld [vmem:[%s1041_s1 + $0x20] sm:$0xff] }
   0x5   :  { %v241_v12 = vld [vmem:[%s1041_s1 + $0x18] sm:$0xff]  ;;  %v243_v16 = vld [vmem:[%s1041_s1 + $0x28] sm:$0xff]  ;;  %v34_v17 = vld [vmem:[%s1040_s0 + $0xa0] sm:$0xff] }
   0x6   :  { %98 = vperm.xlu1 %773, %v31_v3   ;;  %95 = vperm.xlu0 %772, %v30_v4   ;;  %v723_v14 = vpack.c.bf16 %v241_v12, %v240_v11  ;;  %v18_v18 = vld [vmem:[%s1040_s0 + $0x20] sm:$0xff] }
   0x7   :  { %720 = vmatprep.subr.bf16.mxu0 %v719_v13  ;;  %751 = vmatprep.subr.bf16.mxu1 %v719_v13 }
   0x8   :  { %722 = vmatpush3.bf16.msra.mxu0 %v719_v13  ;;  %759 = vmatpush3.bf16.msra.mxu1 %v719_v13 }
   0xa   :  { %101 = vperm.xlu1 %773, %v32_v5   ;;  %53 = vperm.xlu0 %772, %v16_v6  }
   0xe   :  { %104 = vperm.xlu1 %773, %v33_v7   ;;  %56 = vperm.xlu0 %772, %v17_v8  }
   0xf   :  { %7 = vsyncpa [#allocation3], 0  ;;  %724 = vmatprep.subr.bf16.mxu0 %v723_v14  ;;  %752 = vmatprep.subr.bf16.mxu1 %v723_v14  ;;  %v727_v19 = vpack.c.bf16 %v243_v16, %v242_v15  ;;  %v244_v20 = vld [vmem:[%s1041_s1 + $0x30] sm:$0xff]  ;;  %v245_v21 = vld [vmem:[%s1041_s1 + $0x38] sm:$0xff]  ;;  %v12_v57 = vlaneseq  ;;  %v799_v61 = vmov 1.0  }
  0x10   :  { %v35_v22 = vld [vmem:[%s1040_s0 + $0xa8] sm:$0xff]  ;;  %726 = vmatpush3.bf16.msra.mxu0 %v723_v14  ;;  %760 = vmatpush3.bf16.msra.mxu1 %v723_v14  ;;  %v731_v24 = vpack.c.bf16 %v245_v21, %v244_v20  ;;  %v246_v25 = vld [vmem:[%s1041_s1 + $0x40] sm:$0xff]  ;;  %v36_v27 = vld [vmem:[%s1040_s0 + $0xb0] sm:$0xff] }
  0x11   :  { %v19_v23 = vld [vmem:[%s1040_s0 + $0x28] sm:$0xff]  ;;  %728 = vmatprep.subr.bf16.mxu0 %v727_v19  ;;  %753 = vmatprep.subr.bf16.mxu1 %v727_v19  ;;  %v20_v28 = vld [vmem:[%s1040_s0 + $0x30] sm:$0xff]  ;;  %v249_v31 = vld [vmem:[%s1041_s1 + $0x58] sm:$0xff]  ;;  %v962_v58 = vand.u32 127, %v12_v57 }
  0x12   :  { %107 = vperm.xlu1 %773, %v34_v17   ;;  %59 = vperm.xlu0 %772, %v18_v18   ;;  %v247_v26 = vld [vmem:[%s1041_s1 + $0x48] sm:$0xff]  ;;  %v248_v30 = vld [vmem:[%s1041_s1 + $0x50] sm:$0xff]  ;;  %v37_v32 = vld [vmem:[%s1040_s0 + $0xb8] sm:$0xff] }
  0x13   :  { %v735_v29 = vpack.c.bf16 %v247_v26, %v246_v25  ;;  %v21_v33 = vld [vmem:[%s1040_s0 + $0x38] sm:$0xff]  ;;  %v739_v34 = vpack.c.bf16 %v249_v31, %v248_v30  ;;  %v250_v35 = vld [vmem:[%s1041_s1 + $0x60] sm:$0xff]  ;;  %v251_v36 = vld [vmem:[%s1041_s1 + $0x68] sm:$0xff] }
  0x14   :  { %730 = vmatpush3.bf16.msra.mxu0 %v727_v19  ;;  %761 = vmatpush3.bf16.msra.mxu1 %v727_v19  ;;  %v38_v37 = vld [vmem:[%s1040_s0 + $0xc0] sm:$0xff]  ;;  %v743_v39 = vpack.c.bf16 %v251_v36, %v250_v35  ;;  %v252_v40 = vld [vmem:[%s1041_s1 + $0x70] sm:$0xff]  ;;  %v253_v41 = vld [vmem:[%s1041_s1 + $0x78] sm:$0xff] }
  0x15   :  { %732 = vmatprep.subr.bf16.mxu0 %v731_v24  ;;  %754 = vmatprep.subr.bf16.mxu1 %v731_v24  ;;  %v22_v38 = vld [vmem:[%s1040_s0 + $0x40] sm:$0xff]  ;;  %v39_v42 = vld [vmem:[%s1040_s0 + $0xc8] sm:$0xff]  ;;  %v747_v44 = vpack.c.bf16 %v253_v41, %v252_v40  ;;  %v40_v45 = vld [vmem:[%s1040_s0 + $0xd0] sm:$0xff] }
  0x16   :  { %110 = vperm.xlu1 %773, %v35_v22   ;;  %62 = vperm.xlu0 %772, %v19_v23   ;;  %v23_v43 = vld [vmem:[%s1040_s0 + $0x48] sm:$0xff]  ;;  %v24_v46 = vld [vmem:[%s1040_s0 + $0x50] sm:$0xff]  ;;  %v41_v47 = vld [vmem:[%s1040_s0 + $0xd8] sm:$0xff] }
  0x17   :  { %v25_v48 = vld [vmem:[%s1040_s0 + $0x58] sm:$0xff]  ;;  %v42_v49 = vld [vmem:[%s1040_s0 + $0xe0] sm:$0xff]  ;;  %v43_v51 = vld [vmem:[%s1040_s0 + $0xe8] sm:$0xff] }
  0x18   :  { %734 = vmatpush3.bf16.msra.mxu0 %v731_v24  ;;  %762 = vmatpush3.bf16.msra.mxu1 %v731_v24  ;;  %v26_v50 = vld [vmem:[%s1040_s0 + $0x60] sm:$0xff]  ;;  %v27_v52 = vld [vmem:[%s1040_s0 + $0x68] sm:$0xff]  ;;  %v44_v53 = vld [vmem:[%s1040_s0 + $0xf0] sm:$0xff] }
  0x19   :  { %736 = vmatprep.subr.bf16.mxu0 %v735_v29  ;;  %755 = vmatprep.subr.bf16.mxu1 %v735_v29  ;;  %v28_v54 = vld [vmem:[%s1040_s0 + $0x70] sm:$0xff]  ;;  %v45_v55 = vld [vmem:[%s1040_s0 + $0xf8] sm:$0xff] }
  0x1a   :  { %113 = vperm.xlu1 %773, %v36_v27   ;;  %65 = vperm.xlu0 %772, %v20_v28   ;;  %v29_v56 = vld [vmem:[%s1040_s0 + $0x78] sm:$0xff]  ;;  %s800_s0 = smov [#allocation2]  }
  0x1b   :  { %s516_s20 = sshll.u32 %s800_s0, 4  ;;  %s517_s20 = int_to_ptr.vmem [resolvable:$true] %s516_s20 }
  0x1c   :  { %738 = vmatpush3.bf16.msra.mxu0 %v735_v29  ;;  %763 = vmatpush3.bf16.msra.mxu1 %v735_v29  ;;  %s774_s21 = scalar_lea.vmem %s517_s20, 4096  ;;  %p779_p1 = scmp.lt.s32.totalorder %s517_s20, %s517_s20 }
  0x1d   :  { %740 = vmatprep.subr.bf16.mxu0 %v739_v34  ;;  %756 = vmatprep.subr.bf16.mxu1 %v739_v34  ;;  %p775_p0 = scmp.ne.s32.totalorder %s517_s20, %s774_s21  ;;  %p780_p2 = scmp.lt.s32.totalorder %s774_s21, %s774_s21 }
  0x1e   :  { %116 = vperm.xlu1 %773, %v37_v32   ;;  %68 = vperm.xlu0 %772, %v21_v33  }
  0x1f   :  { %p781_p3 = por %p780_p2, %p779_p1 }
  0x20   :  { %742 = vmatpush3.bf16.msra.mxu0 %v739_v34  ;;  %764 = vmatpush3.bf16.msra.mxu1 %v739_v34 }
  0x21   :  { %744 = vmatprep.subr.bf16.mxu0 %v743_v39  ;;  %757 = vmatprep.subr.bf16.mxu1 %v743_v39  ;;  %p782_p4 = pnand %p781_p3, %p775_p0 }
  0x22   :  { %119 = vperm.xlu1 %773, %v38_v37   ;;  %71 = vperm.xlu0 %772, %v22_v38  }
  0x24   :  { %746 = vmatpush3.bf16.msra.mxu0 %v743_v39  ;;  %765 = vmatpush3.bf16.msra.mxu1 %v743_v39 }
  0x25   :  { %748 = vmatprep.subr.bf16.mxu0 %v747_v44  ;;  %758 = vmatprep.subr.bf16.mxu1 %v747_v44 }
  0x26   :  { %122 = vperm.xlu1 %773, %v39_v42   ;;  %74 = vperm.xlu0 %772, %v23_v43  }
  0x28   :  { %750 = vmatpush3.bf16.msra.mxu0 %v747_v44  ;;  %766 = vmatpush3.bf16.msra.mxu1 %v747_v44 }
  0x2a   :  { %125 = vperm.xlu1 %773, %v40_v45   ;;  %77 = vperm.xlu0 %772, %v24_v46  }
  0x2e   :  { %128 = vperm.xlu1 %773, %v41_v47   ;;  %80 = vperm.xlu0 %772, %v25_v48  }
  0x32   :  { %131 = vperm.xlu1 %773, %v42_v49   ;;  %83 = vperm.xlu0 %772, %v26_v50  }
  0x36   :  { %134 = vperm.xlu1 %773, %v43_v51   ;;  %86 = vperm.xlu0 %772, %v27_v52  }
  0x3a   :  { %137 = vperm.xlu1 %773, %v44_v53   ;;  %89 = vperm.xlu0 %772, %v28_v54  }
  0x3e   :  { %140 = vperm.xlu1 %773, %v45_v55   ;;  %92 = vperm.xlu0 %772, %v29_v56  }
  0x81   :  { %v51_v59 = vpop.permute.xlu1 %50  ;;  %v48_v60 = vpop.permute.xlu0 %47 }
  0x82   :  { %vm143_vm0 = vcmp.eq.s32.totalorder %v51_v59, %v962_v58  ;;  %vm142_vm1 = vcmp.eq.s32.totalorder %v48_v60, %v962_v58 }
  0x83   :  { %671 = vmatprep.mubr.msk.f32.mxu0 %vm142_vm1, %v799_v61 }
  0x84   :  { %672 = vmatmul.mubr.msk.f32.vlgmr.msra.gmra.mrb[0].mxu0 %vm143_vm0, %v799_v61 }
  0x85   :  { %v99_v62 = vpop.permute.xlu1 %98  ;;  %v96_v63 = vpop.permute.xlu0 %95 }
  0x86   :  { %vm159_vm2 = vcmp.eq.s32.totalorder %v99_v62, %v962_v58  ;;  %vm158_vm3 = vcmp.eq.s32.totalorder %v96_v63, %v962_v58 }
  0x87   :  { %695 = vmatprep.mubr.msk.f32.mxu1 %vm158_vm3, %v799_v61 }
  0x88   :  { %696 = vmatmul.mubr.msk.f32.vlgmr.msra.gmra.mrb[0].mxu1 %vm159_vm2, %v799_v61 }
  0x89   :  { %v102_v0 = vpop.permute.xlu1 %101  ;;  %v54_v1 = vpop.permute.xlu0 %53 }
  0x8a   :  { %vm160_vm4 = vcmp.eq.s32.totalorder %v102_v0, %v962_v58  ;;  %vm144_vm5 = vcmp.eq.s32.totalorder %v54_v1, %v962_v58 }
  0x8b   :  { %674 = vmatprep.mubr.msk.f32.mxu0 %vm144_vm5, %v799_v61  ;;  %698 = vmatprep.mubr.msk.f32.mxu1 %vm160_vm4, %v799_v61 }
  0x8d   :  { %v105_v2 = vpop.permute.xlu1 %104  ;;  %v57_v3 = vpop.permute.xlu0 %56 }
  0x8e   :  { %vm161_vm6 = vcmp.eq.s32.totalorder %v105_v2, %v962_v58  ;;  %vm145_vm7 = vcmp.eq.s32.totalorder %v57_v3, %v962_v58 }
  0x8f   :  { %675 = vmatmul.mubr.msk.f32.gmra.mrb[2].mxu0 %vm145_vm7, %v799_v61  ;;  %699 = vmatmul.mubr.msk.f32.gmra.mrb[2].mxu1 %vm161_vm6, %v799_v61 }
  0x91   :  { %v108_v4 = vpop.permute.xlu1 %107  ;;  %v60_v5 = vpop.permute.xlu0 %59 }
  0x92   :  { %vm162_vm8 = vcmp.eq.s32.totalorder %v108_v4, %v962_v58  ;;  %vm146_vm9 = vcmp.eq.s32.totalorder %v60_v5, %v962_v58 }
  0x93   :  { %677 = vmatprep.mubr.msk.f32.mxu0 %vm146_vm9, %v799_v61  ;;  %701 = vmatprep.mubr.msk.f32.mxu1 %vm162_vm8, %v799_v61 }
  0x95   :  { %v111_v6 = vpop.permute.xlu1 %110  ;;  %v63_v7 = vpop.permute.xlu0 %62 }
  0x96   :  { %vm163_vm10 = vcmp.eq.s32.totalorder %v111_v6, %v962_v58  ;;  %vm147_vm11 = vcmp.eq.s32.totalorder %v63_v7, %v962_v58 }
  0x97   :  { %678 = vmatmul.mubr.msk.f32.gmra.mrb[4].mxu0 %vm147_vm11, %v799_v61  ;;  %702 = vmatmul.mubr.msk.f32.gmra.mrb[4].mxu1 %vm163_vm10, %v799_v61 }
  0x99   :  { %v114_v8 = vpop.permute.xlu1 %113  ;;  %v66_v9 = vpop.permute.xlu0 %65 }
  0x9a   :  { %vm164_vm12 = vcmp.eq.s32.totalorder %v114_v8, %v962_v58  ;;  %vm148_vm13 = vcmp.eq.s32.totalorder %v66_v9, %v962_v58 }
  0x9b   :  { %680 = vmatprep.mubr.msk.f32.mxu0 %vm148_vm13, %v799_v61  ;;  %704 = vmatprep.mubr.msk.f32.mxu1 %vm164_vm12, %v799_v61 }
  0x9d   :  { %v117_v10 = vpop.permute.xlu1 %116  ;;  %v69_v11 = vpop.permute.xlu0 %68 }
  0x9e   :  { %vm165_vm14 = vcmp.eq.s32.totalorder %v117_v10, %v962_v58  ;;  %vm149_vm15 = vcmp.eq.s32.totalorder %v69_v11, %v962_v58 }
  0x9f   :  { %681 = vmatmul.mubr.msk.f32.gmra.mrb[6].mxu0 %vm149_vm15, %v799_v61  ;;  %705 = vmatmul.mubr.msk.f32.gmra.mrb[6].mxu1 %vm165_vm14, %v799_v61 }
  0xa1   :  { %v120_v12 = vpop.permute.xlu1 %119  ;;  %v72_v13 = vpop.permute.xlu0 %71 }
  0xa2   :  { %vm166_vm0 = vcmp.eq.s32.totalorder %v120_v12, %v962_v58  ;;  %vm150_vm1 = vcmp.eq.s32.totalorder %v72_v13, %v962_v58 }
  0xa3   :  { %683 = vmatprep.mubr.msk.f32.mxu0 %vm150_vm1, %v799_v61  ;;  %707 = vmatprep.mubr.msk.f32.mxu1 %vm166_vm0, %v799_v61 }
  0xa5   :  { %v123_v14 = vpop.permute.xlu1 %122  ;;  %v75_v15 = vpop.permute.xlu0 %74 }
  0xa6   :  { %vm167_vm2 = vcmp.eq.s32.totalorder %v123_v14, %v962_v58  ;;  %vm151_vm3 = vcmp.eq.s32.totalorder %v75_v15, %v962_v58 }
  0xa7   :  { %684 = vmatmul.mubr.msk.f32.gmra.mrb[8].mxu0 %vm151_vm3, %v799_v61  ;;  %708 = vmatmul.mubr.msk.f32.gmra.mrb[8].mxu1 %vm167_vm2, %v799_v61 }
  0xa9   :  { %v126_v16 = vpop.permute.xlu1 %125  ;;  %v78_v17 = vpop.permute.xlu0 %77 }
  0xaa   :  { %vm168_vm4 = vcmp.eq.s32.totalorder %v126_v16, %v962_v58  ;;  %vm152_vm5 = vcmp.eq.s32.totalorder %v78_v17, %v962_v58 }
  0xab   :  { %686 = vmatprep.mubr.msk.f32.mxu0 %vm152_vm5, %v799_v61  ;;  %710 = vmatprep.mubr.msk.f32.mxu1 %vm168_vm4, %v799_v61 }
  0xad   :  { %v129_v18 = vpop.permute.xlu1 %128  ;;  %v81_v19 = vpop.permute.xlu0 %80 }
  0xae   :  { %vm169_vm6 = vcmp.eq.s32.totalorder %v129_v18, %v962_v58  ;;  %vm153_vm7 = vcmp.eq.s32.totalorder %v81_v19, %v962_v58 }
  0xaf   :  { %687 = vmatmul.mubr.msk.f32.gmra.mrb[10].mxu0 %vm153_vm7, %v799_v61  ;;  %711 = vmatmul.mubr.msk.f32.gmra.mrb[10].mxu1 %vm169_vm6, %v799_v61 }
  0xb1   :  { %v132_v20 = vpop.permute.xlu1 %131  ;;  %v84_v21 = vpop.permute.xlu0 %83 }
  0xb2   :  { %vm170_vm8 = vcmp.eq.s32.totalorder %v132_v20, %v962_v58  ;;  %vm154_vm9 = vcmp.eq.s32.totalorder %v84_v21, %v962_v58 }
  0xb3   :  { %689 = vmatprep.mubr.msk.f32.mxu0 %vm154_vm9, %v799_v61  ;;  %713 = vmatprep.mubr.msk.f32.mxu1 %vm170_vm8, %v799_v61 }
  0xb5   :  { %v135_v22 = vpop.permute.xlu1 %134  ;;  %v87_v23 = vpop.permute.xlu0 %86 }
  0xb6   :  { %vm171_vm10 = vcmp.eq.s32.totalorder %v135_v22, %v962_v58  ;;  %vm155_vm11 = vcmp.eq.s32.totalorder %v87_v23, %v962_v58 }
  0xb7   :  { %690 = vmatmul.mubr.msk.f32.gmra.mrb[12].mxu0 %vm155_vm11, %v799_v61  ;;  %714 = vmatmul.mubr.msk.f32.gmra.mrb[12].mxu1 %vm171_vm10, %v799_v61 }
  0xb9   :  { %v138_v24 = vpop.permute.xlu1 %137  ;;  %v90_v25 = vpop.permute.xlu0 %89 }
  0xba   :  { %vm172_vm12 = vcmp.eq.s32.totalorder %v138_v24, %v962_v58  ;;  %vm156_vm13 = vcmp.eq.s32.totalorder %v90_v25, %v962_v58 }
  0xbb   :  { %692 = vmatprep.mubr.msk.f32.mxu0 %vm156_vm13, %v799_v61  ;;  %716 = vmatprep.mubr.msk.f32.mxu1 %vm172_vm12, %v799_v61 }
  0xbd   :  { %v141_v26 = vpop.permute.xlu1 %140  ;;  %v93_v27 = vpop.permute.xlu0 %92 }
  0xbe   :  { %vm173_vm14 = vcmp.eq.s32.totalorder %v141_v26, %v962_v58  ;;  %vm157_vm15 = vcmp.eq.s32.totalorder %v93_v27, %v962_v58 }
  0xbf   :  { %693 = vmatmul.mubr.msk.f32.gmra.mrb[14].mxu0 %vm157_vm15, %v799_v61  ;;  %717 = vmatmul.mubr.msk.f32.gmra.mrb[14].mxu1 %vm173_vm14, %v799_v61 }
 0x157   :  { %v673_v28 = vpop.f32.mrb[0].mxu0 }
 0x158   :  { %480 = vst [vmem:[#allocation2 + $0x8] sm:$0xff] %v673_v28  ;;  %v320_v29 = vpop.f32.mrb[1].mxu0 }
 0x159   :  { %479 = vst [vmem:[#allocation2] sm:$0xff] %v320_v29 }
 0x15b   :  { %v697_v30 = vpop.f32.mrb[0].mxu1 }
 0x15c   :  { %496 = vst [vmem:[#allocation2 + $0x88] sm:$0xff] %v697_v30  ;;  %v400_v31 = vpop.f32.mrb[1].mxu1 }
 0x15d   :  { %495 = vst [vmem:[#allocation2 + $0x80] sm:$0xff] %v400_v31 }
 0x162   :  { %v676_v32 = vpop.f32.mrb[2].mxu0  ;;  %v700_v33 = vpop.f32.mrb[2].mxu1 }
 0x163   :  { %482 = vst [vmem:[#allocation2 + $0x18] sm:$0xff] %v676_v32  ;;  %498 = vst [vmem:[#allocation2 + $0x98] sm:$0xff] %v700_v33  ;;  %v330_v34 = vpop.f32.mrb[3].mxu0  ;;  %v410_v35 = vpop.f32.mrb[3].mxu1 }
 0x164   :  { %481 = vst [vmem:[#allocation2 + $0x10] sm:$0xff] %v330_v34  ;;  %497 = vst [vmem:[#allocation2 + $0x90] sm:$0xff] %v410_v35 }
 0x16a   :  { %v679_v36 = vpop.f32.mrb[4].mxu0  ;;  %v703_v37 = vpop.f32.mrb[4].mxu1 }
 0x16b   :  { %484 = vst [vmem:[#allocation2 + $0x28] sm:$0xff] %v679_v36  ;;  %500 = vst [vmem:[#allocation2 + $0xa8] sm:$0xff] %v703_v37  ;;  %v340_v38 = vpop.f32.mrb[5].mxu0  ;;  %v420_v39 = vpop.f32.mrb[5].mxu1 }
 0x16c   :  { %483 = vst [vmem:[#allocation2 + $0x20] sm:$0xff] %v340_v38  ;;  %499 = vst [vmem:[#allocation2 + $0xa0] sm:$0xff] %v420_v39 }
 0x172   :  { %v682_v40 = vpop.f32.mrb[6].mxu0  ;;  %v706_v41 = vpop.f32.mrb[6].mxu1 }
 0x173   :  { %486 = vst [vmem:[#allocation2 + $0x38] sm:$0xff] %v682_v40  ;;  %502 = vst [vmem:[#allocation2 + $0xb8] sm:$0xff] %v706_v41  ;;  %v350_v42 = vpop.f32.mrb[7].mxu0  ;;  %v430_v43 = vpop.f32.mrb[7].mxu1 }
 0x174   :  { %485 = vst [vmem:[#allocation2 + $0x30] sm:$0xff] %v350_v42  ;;  %501 = vst [vmem:[#allocation2 + $0xb0] sm:$0xff] %v430_v43 }
 0x17a   :  { %v685_v44 = vpop.f32.mrb[8].mxu0  ;;  %v709_v45 = vpop.f32.mrb[8].mxu1 }
 0x17b   :  { %488 = vst [vmem:[#allocation2 + $0x48] sm:$0xff] %v685_v44  ;;  %504 = vst [vmem:[#allocation2 + $0xc8] sm:$0xff] %v709_v45  ;;  %v360_v46 = vpop.f32.mrb[9].mxu0  ;;  %v440_v47 = vpop.f32.mrb[9].mxu1 }
 0x17c   :  { %487 = vst [vmem:[#allocation2 + $0x40] sm:$0xff] %v360_v46  ;;  %503 = vst [vmem:[#allocation2 + $0xc0] sm:$0xff] %v440_v47 }
 0x182   :  { %v688_v48 = vpop.f32.mrb[10].mxu0  ;;  %v712_v49 = vpop.f32.mrb[10].mxu1 }
 0x183   :  { %490 = vst [vmem:[#allocation2 + $0x58] sm:$0xff] %v688_v48  ;;  %506 = vst [vmem:[#allocation2 + $0xd8] sm:$0xff] %v712_v49  ;;  %v370_v50 = vpop.f32.mrb[11].mxu0  ;;  %v450_v51 = vpop.f32.mrb[11].mxu1 }
 0x184   :  { %489 = vst [vmem:[#allocation2 + $0x50] sm:$0xff] %v370_v50  ;;  %505 = vst [vmem:[#allocation2 + $0xd0] sm:$0xff] %v450_v51 }
 0x18a   :  { %v691_v52 = vpop.f32.mrb[12].mxu0  ;;  %v715_v53 = vpop.f32.mrb[12].mxu1 }
 0x18b   :  { %492 = vst [vmem:[#allocation2 + $0x68] sm:$0xff] %v691_v52  ;;  %508 = vst [vmem:[#allocation2 + $0xe8] sm:$0xff] %v715_v53  ;;  %v380_v54 = vpop.f32.mrb[13].mxu0  ;;  %v460_v55 = vpop.f32.mrb[13].mxu1 }
 0x18c   :  { %491 = vst [vmem:[#allocation2 + $0x60] sm:$0xff] %v380_v54  ;;  %507 = vst [vmem:[#allocation2 + $0xe0] sm:$0xff] %v460_v55 }
 0x192   :  { %v694_v56 = vpop.f32.mrb[14].mxu0  ;;  %v718_v57 = vpop.f32.mrb[14].mxu1 }
 0x193   :  { %494 = vst [vmem:[#allocation2 + $0x78] sm:$0xff] %v694_v56  ;;  %510 = vst [vmem:[#allocation2 + $0xf8] sm:$0xff] %v718_v57  ;;  %v390_v58 = vpop.f32.mrb[15].mxu0  ;;  %v470_v59 = vpop.f32.mrb[15].mxu1 }
 0x194   :  { %493 = vst [vmem:[#allocation2 + $0x70] sm:$0xff] %v390_v58  ;;  %509 = vst [vmem:[#allocation2 + $0xf0] sm:$0xff] %v470_v59 }
 0x195   :  { %785 = shalt.err (!%p782_p4)
}
 0x196   :  { %s786_s24 = scalar_lea.hbm %s1042_s2, 4096 }
 0x197   :  { %p787_p5 = scmp.ne.s32.totalorder %s1042_s2, %s786_s24  ;;  %p790_p6 = scmp.lt.u32.totalorder %s786_s24, %s1042_s2 }
 0x199   :  { %p792_p7 = pnand %p790_p6, %p787_p5 }
 0x19b   :  { %795 = shalt.err (!%p792_p7)
}
 0x19c   :  { %s801_s28 = smov 128   ;;  %s802_s29 = smov 8  }
 0x19d   :  { %522 = dma.vmem_to_hbm [thread:$0]  %s517_s20, 4096, %s1042_s2, [#allocation3], %s801_s28, %s801_s28, %s802_s29  }
 0x19e   :  { %796 = dma.done.wait [#allocation3], 4096  }
 0x19f   :  { %797 = vsyncadd [#allocation3], 4294963200 }
 0x1a0   :  { %526 = vsyncpa [#allocation3], 1 }

</bundles_post_ra>
